<compile_context>
chip_gen: v7x
topology: tpu7x:2x2x1
jax: 0.10.0
libtpu: 0.0.40
codegen_flags: <defaults>
</compile_context>

<pallas_src>
import functools

import jax
import jax.numpy as jnp
from jax.experimental import pallas as pl
from jax.experimental.pallas import tpu as pltpu

_LANE = 128      # lane width (last dim)
_SUBLANE = 8     # sublane width (second-to-last dim)


def _round_up(x, m):
    return ((x + m - 1) // m) * m


def _mlp_kernel(n_linear, x_ref, w_ref, b_ref, out_ref):
    """One batch tile of the Linear/Sigmoid stack.

    x_ref  : (TB, 128) f32               lane-padded flattened input
    w_ref  : (n_linear, 128, 128) f32    zero-padded weights, (in, out) layout
    b_ref  : (n_linear, 8, 128) f32      bias in sublane 0, zeros elsewhere
    out_ref: (TB, 128) f32               lane-padded logits (valid cols = out_features)
    """
    h = x_ref[...]                                   # (TB, 128)
    for i in range(n_linear):                        # static unroll (n_linear is small)
        w = w_ref[i]                                 # (128, 128)
        b = b_ref[i][0:1, :]                         # (1, 128), broadcasts over batch
        h = jnp.dot(h, w, preferred_element_type=jnp.float32) + b
        if i < n_linear - 1:                         # Sigmoid between layers, not after last
            h = jax.nn.sigmoid(h)
    out_ref[...] = h.astype(out_ref.dtype)


def init_params(num_layers, key):
    """Deterministic params matching NeuralNetwork(numLayers): 32 -> 6 -> [6]* -> 5."""
    if num_layers <= 1:
        raise ValueError("Invalid number of layers!")
    dims = [32, 6] + [6] * (num_layers - 2) + [5]
    params = []
    for i in range(len(dims) - 1):
        fan_in, fan_out = dims[i], dims[i + 1]
        key, kw, kb = jax.random.split(key, 3)
        bound = 1.0 / jnp.sqrt(fan_in)
        # PyTorch Linear stores (out, in); we store transposed (in, out) for x @ W.
        w = jax.random.uniform(kw, (fan_in, fan_out), jnp.float32, -bound, bound)
        b = jax.random.uniform(kb, (1, fan_out), jnp.float32, -bound, bound)
        params.append((w, b))
    return params


def pack_params(params):
    """Pack per-layer (w, b) into two (8,128)-aligned zero-padded slabs (host, once)."""
    n = len(params)
    w_slab = jnp.zeros((n, _LANE, _LANE), jnp.float32)
    b_slab = jnp.zeros((n, _SUBLANE, _LANE), jnp.float32)
    for i, (w, b) in enumerate(params):
        fan_in, fan_out = w.shape
        w_slab = w_slab.at[i, :fan_in, :fan_out].set(w)
        b_slab = b_slab.at[i, 0, :fan_out].set(b[0])
    return w_slab, b_slab


def neural_network_forward(x, params, *, tile_batch=1024):
    """Forward pass: nn.Flatten() + Linear/Sigmoid stack in a single pallas_call."""
    batch = x.shape[0]
    x_flat = x.reshape(batch, -1).astype(jnp.float32)      # nn.Flatten()
    in_features = x_flat.shape[1]
    assert in_features == 32, "flattened feature dim must be 32"

    n_linear = len(params)
    out_features = params[-1][0].shape[1]
    w_slab, b_slab = pack_params(params)

    # Batch tile: multiple of 8 sublanes; ~0.5 MiB/buffer at tb=1024 -> fits any VMEM (incl. v7x 64 MiB).
    tb = min(tile_batch, _round_up(max(batch, 1), _SUBLANE))
    b_pad = _round_up(batch, tb)

    # Lane-pad flattened input to 128 and pad batch to a tile multiple (zeros are harmless).
    x_pad = jnp.zeros((b_pad, _LANE), jnp.float32).at[:batch, :in_features].set(x_flat)

    grid = (b_pad // tb,)
    kernel = functools.partial(_mlp_kernel, n_linear)

    out_pad = pl.pallas_call(
        kernel,
        out_shape=jax.ShapeDtypeStruct((b_pad, _LANE), jnp.float32),
        grid=grid,
        in_specs=[
            pl.BlockSpec((tb, _LANE), lambda i: (i, 0)),                      # activations: tiled over batch
            pl.BlockSpec((n_linear, _LANE, _LANE), lambda i: (0, 0, 0)),      # weight slab: resident
            pl.BlockSpec((n_linear, _SUBLANE, _LANE), lambda i: (0, 0, 0)),   # bias slab: resident
        ],
        out_specs=pl.BlockSpec((tb, _LANE), lambda i: (i, 0)),
        compiler_params=pltpu.CompilerParams(dimension_semantics=("parallel",)),
    )(x_pad, w_slab, b_slab)

    return out_pad[:batch, :out_features]


def _reference_forward(x, params):
    h = x.reshape(x.shape[0], -1).astype(jnp.float32)
    for i, (w, b) in enumerate(params):
        h = h @ w + b
        if i < len(params) - 1:
            h = jax.nn.sigmoid(h)
    return h


if __name__ == "__main__":
    key = jax.random.PRNGKey(0)
    key, kx = jax.random.split(key)

    num_layers = 4                    # 32 -> 6 -> 6 -> 6 -> 5 with Sigmoid between layers
    batch = 8
    x = jax.random.normal(kx, (batch, 2, 16), jnp.float32)   # flattens to (8, 32)

    params = init_params(num_layers, key)

    out = neural_network_forward(x, params)
    out = jax.block_until_ready(out)

    ref = _reference_forward(x, params)
    assert out.shape == (batch, 5)
    assert jnp.allclose(out, ref, atol=1e-5, rtol=1e-5), "mismatch vs reference"

    print("KERNEL_OK")
</pallas_src>

<mosaic_0001>
module attributes {stable_mosaic.version = 11 : i64} {
  func.func @_mlp_kernel(%arg0: i32, %arg1: memref<8x128xf32, #tpu.memory_space<vmem>>, %arg2: memref<4x128x128xf32, #tpu.memory_space<vmem>>, %arg3: memref<4x8x128xf32, #tpu.memory_space<vmem>>, %arg4: memref<8x128xf32, #tpu.memory_space<vmem>>) attributes {dimension_semantics = [#tpu.dimension_semantics<parallel>], iteration_bounds = array<i64: 1>, scalar_prefetch = 0 : i64, scratch_operands = 0 : i64, tpu.core_type = #tpu.core_type<tc>, window_params = [{transform_indices = @transform_0, window_bounds = array<i64: 8, 128>}, {pipeline_mode = #tpu.pipeline_mode<synchronous>, transform_indices = @transform_1, window_bounds = array<i64: 4, 128, 128>}, {pipeline_mode = #tpu.pipeline_mode<synchronous>, transform_indices = @transform_2, window_bounds = array<i64: 4, 8, 128>}, {transform_indices = @transform_3, window_bounds = array<i64: 8, 128>}]} {
    %c0 = arith.constant 0 : index
    %c0_0 = arith.constant 0 : index
    %0 = vector.load %arg1[%c0, %c0_0] : memref<8x128xf32, #tpu.memory_space<vmem>>, vector<8x128xf32>
    %c0_1 = arith.constant 0 : index
    %c0_2 = arith.constant 0 : index
    %c0_3 = arith.constant 0 : index
    %1 = vector.load %arg2[%c0_1, %c0_2, %c0_3] : memref<4x128x128xf32, #tpu.memory_space<vmem>>, vector<1x128x128xf32>
    %2 = vector.shape_cast %1 : vector<1x128x128xf32> to vector<128x128xf32>
    %c0_4 = arith.constant 0 : index
    %c0_5 = arith.constant 0 : index
    %c0_6 = arith.constant 0 : index
    %3 = vector.load %arg3[%c0_4, %c0_5, %c0_6] : memref<4x8x128xf32, #tpu.memory_space<vmem>>, vector<1x8x128xf32>
    %4 = vector.shape_cast %3 : vector<1x8x128xf32> to vector<8x128xf32>
    %5 = vector.extract_strided_slice %4 {offsets = [0, 0], sizes = [1, 128], strides = [1, 1]} : vector<8x128xf32> to vector<1x128xf32>
    %cst = arith.constant dense<0.000000e+00> : vector<8x128xf32>
    %6 = tpu.matmul %0, %2, %cst {dimension_numbers = #tpu.dot_dimension_numbers<[1], [0], [0], [1], [0, 0, 1, 1], [], []>} : vector<8x128xf32>, vector<128x128xf32>, vector<8x128xf32> -> vector<8x128xf32>
    %7 = vector.broadcast %5 : vector<1x128xf32> to vector<8x128xf32>
    %8 = arith.addf %6, %7 : vector<8x128xf32>
    %9 = arith.negf %8 : vector<8x128xf32>
    %10 = math.exp %9 : vector<8x128xf32>
    %cst_7 = arith.constant 1.000000e+00 : f32
    %11 = vector.broadcast %cst_7 : f32 to vector<8x128xf32>
    %12 = arith.addf %11, %10 : vector<8x128xf32>
    %13 = arith.divf %11, %12 : vector<8x128xf32>
    %c1 = arith.constant 1 : index
    %c0_8 = arith.constant 0 : index
    %c0_9 = arith.constant 0 : index
    %14 = vector.load %arg2[%c1, %c0_8, %c0_9] : memref<4x128x128xf32, #tpu.memory_space<vmem>>, vector<1x128x128xf32>
    %15 = vector.shape_cast %14 : vector<1x128x128xf32> to vector<128x128xf32>
    %c1_10 = arith.constant 1 : index
    %c0_11 = arith.constant 0 : index
    %c0_12 = arith.constant 0 : index
    %16 = vector.load %arg3[%c1_10, %c0_11, %c0_12] : memref<4x8x128xf32, #tpu.memory_space<vmem>>, vector<1x8x128xf32>
    %17 = vector.shape_cast %16 : vector<1x8x128xf32> to vector<8x128xf32>
    %18 = vector.extract_strided_slice %17 {offsets = [0, 0], sizes = [1, 128], strides = [1, 1]} : vector<8x128xf32> to vector<1x128xf32>
    %cst_13 = arith.constant dense<0.000000e+00> : vector<8x128xf32>
    %19 = tpu.matmul %13, %15, %cst_13 {dimension_numbers = #tpu.dot_dimension_numbers<[1], [0], [0], [1], [0, 0, 1, 1], [], []>} : vector<8x128xf32>, vector<128x128xf32>, vector<8x128xf32> -> vector<8x128xf32>
    %20 = vector.broadcast %18 : vector<1x128xf32> to vector<8x128xf32>
    %21 = arith.addf %19, %20 : vector<8x128xf32>
    %22 = arith.negf %21 : vector<8x128xf32>
    %23 = math.exp %22 : vector<8x128xf32>
    %cst_14 = arith.constant 1.000000e+00 : f32
    %24 = vector.broadcast %cst_14 : f32 to vector<8x128xf32>
    %25 = arith.addf %24, %23 : vector<8x128xf32>
    %26 = arith.divf %24, %25 : vector<8x128xf32>
    %c2 = arith.constant 2 : index
    %c0_15 = arith.constant 0 : index
    %c0_16 = arith.constant 0 : index
    %27 = vector.load %arg2[%c2, %c0_15, %c0_16] : memref<4x128x128xf32, #tpu.memory_space<vmem>>, vector<1x128x128xf32>
    %28 = vector.shape_cast %27 : vector<1x128x128xf32> to vector<128x128xf32>
    %c2_17 = arith.constant 2 : index
    %c0_18 = arith.constant 0 : index
    %c0_19 = arith.constant 0 : index
    %29 = vector.load %arg3[%c2_17, %c0_18, %c0_19] : memref<4x8x128xf32, #tpu.memory_space<vmem>>, vector<1x8x128xf32>
    %30 = vector.shape_cast %29 : vector<1x8x128xf32> to vector<8x128xf32>
    %31 = vector.extract_strided_slice %30 {offsets = [0, 0], sizes = [1, 128], strides = [1, 1]} : vector<8x128xf32> to vector<1x128xf32>
    %cst_20 = arith.constant dense<0.000000e+00> : vector<8x128xf32>
    %32 = tpu.matmul %26, %28, %cst_20 {dimension_numbers = #tpu.dot_dimension_numbers<[1], [0], [0], [1], [0, 0, 1, 1], [], []>} : vector<8x128xf32>, vector<128x128xf32>, vector<8x128xf32> -> vector<8x128xf32>
    %33 = vector.broadcast %31 : vector<1x128xf32> to vector<8x128xf32>
    %34 = arith.addf %32, %33 : vector<8x128xf32>
    %35 = arith.negf %34 : vector<8x128xf32>
    %36 = math.exp %35 : vector<8x128xf32>
    %cst_21 = arith.constant 1.000000e+00 : f32
    %37 = vector.broadcast %cst_21 : f32 to vector<8x128xf32>
    %38 = arith.addf %37, %36 : vector<8x128xf32>
    %39 = arith.divf %37, %38 : vector<8x128xf32>
    %c3 = arith.constant 3 : index
    %c0_22 = arith.constant 0 : index
    %c0_23 = arith.constant 0 : index
    %40 = vector.load %arg2[%c3, %c0_22, %c0_23] : memref<4x128x128xf32, #tpu.memory_space<vmem>>, vector<1x128x128xf32>
    %41 = vector.shape_cast %40 : vector<1x128x128xf32> to vector<128x128xf32>
    %c3_24 = arith.constant 3 : index
    %c0_25 = arith.constant 0 : index
    %c0_26 = arith.constant 0 : index
    %42 = vector.load %arg3[%c3_24, %c0_25, %c0_26] : memref<4x8x128xf32, #tpu.memory_space<vmem>>, vector<1x8x128xf32>
    %43 = vector.shape_cast %42 : vector<1x8x128xf32> to vector<8x128xf32>
    %44 = vector.extract_strided_slice %43 {offsets = [0, 0], sizes = [1, 128], strides = [1, 1]} : vector<8x128xf32> to vector<1x128xf32>
    %cst_27 = arith.constant dense<0.000000e+00> : vector<8x128xf32>
    %45 = tpu.matmul %39, %41, %cst_27 {dimension_numbers = #tpu.dot_dimension_numbers<[1], [0], [0], [1], [0, 0, 1, 1], [], []>} : vector<8x128xf32>, vector<128x128xf32>, vector<8x128xf32> -> vector<8x128xf32>
    %46 = vector.broadcast %44 : vector<1x128xf32> to vector<8x128xf32>
    %47 = arith.addf %45, %46 : vector<8x128xf32>
    %c0_28 = arith.constant 0 : index
    %c0_29 = arith.constant 0 : index
    %48 = vector.load %arg4[%c0_28, %c0_29] : memref<8x128xf32, #tpu.memory_space<vmem>>, vector<8x128xf32>
    tpu.vector_store %arg4[%c0_28, %c0_29], %47 {strides = array<i32>} : memref<8x128xf32, #tpu.memory_space<vmem>>, vector<8x128xf32>,
    return
  }
  func.func @transform_0(%arg0: i32) -> (i32, i32) {
    %c0_i32 = arith.constant 0 : i32
    %c0_i32_0 = arith.constant 0 : i32
    return %arg0, %c0_i32 : i32, i32
  }
  func.func @transform_1(%arg0: i32) -> (i32, i32, i32) {
    %c0_i32 = arith.constant 0 : i32
    %c0_i32_0 = arith.constant 0 : i32
    %c0_i32_1 = arith.constant 0 : i32
    %c0_i32_2 = arith.constant 0 : i32
    return %c0_i32, %c0_i32_0, %c0_i32_1 : i32, i32, i32
  }
  func.func @transform_2(%arg0: i32) -> (i32, i32, i32) {
    %c0_i32 = arith.constant 0 : i32
    %c0_i32_0 = arith.constant 0 : i32
    %c0_i32_1 = arith.constant 0 : i32
    %c0_i32_2 = arith.constant 0 : i32
    return %c0_i32, %c0_i32_0, %c0_i32_1 : i32, i32, i32
  }
  func.func @transform_3(%arg0: i32) -> (i32, i32) {
    %c0_i32 = arith.constant 0 : i32
    %c0_i32_0 = arith.constant 0 : i32
    return %arg0, %c0_i32 : i32, i32
  }
}

</mosaic_0001>

<bundles_post_ra>
// kernel: tpu_custom_call.1
= control target key start
LH: loop header
LB: loop body
LE: loop exit
PB: predicated region body
PF: predicated region fallthrough
CT: control target
= control target key end

     0   :  { %8 = vsyncpa [#allocation3], 0  ;;  %s1011_s0 = inlined_call_operand.hbm [shape: f32[8,128], index: 0, kind: input, shape index: {}]   ;;  %s1012_s1 = inlined_call_operand.hbm [shape: f32[4,128,128], index: 1, kind: input, shape index: {}]   ;;  %s1013_s2 = inlined_call_operand.hbm [shape: f32[4,8,128], index: 2, kind: input, shape index: {}]   ;;  %s1014_s3 = inlined_call_operand.hbm [shape: f32[8,128], index: 3, kind: output, shape index: {}]  }
   0x1   :  { %9 = vsyncpa [#allocation6], 0 }
   0x2   :  { %10 = vsyncpa [#allocation4], 0  ;;  %s882_s12 = smov [#allocation5]   ;;  %s788_s16 = scalar_lea.hbm %s1012_s1, 8192 }
   0x3   :  { %s26_s13 = sshll.u32 %s882_s12, 4  ;;  %p789_p0 = scmp.ne.s32.totalorder %s1012_s1, %s788_s16  ;;  %s27_s13 = int_to_ptr.vmem [resolvable:$true] %s26_s13 }
   0x4   :  { %p792_p1 = scmp.lt.u32.totalorder %s788_s16, %s1012_s1 }
   0x6   :  { %p794_p2 = pnand %p792_p1, %p789_p0 }
   0x8   :  { %797 = shalt.err (!%p794_p2)
}
   0x9   :  { %s798_s21 = scalar_lea.vmem %s27_s13, 8192  ;;  %p803_p4 = scmp.lt.s32.totalorder %s27_s13, %s27_s13 }
   0xa   :  { %p799_p3 = scmp.ne.s32.totalorder %s27_s13, %s798_s21  ;;  %p804_p5 = scmp.lt.s32.totalorder %s798_s21, %s798_s21 }
   0xc   :  { %p805_p6 = por %p804_p5, %p803_p4 }
   0xe   :  { %p806_p7 = pnand %p805_p6, %p799_p3 }
  0x10   :  { %809 = shalt.err (!%p806_p7)
}
  0x11   :  { %s883_s22 = smov 128   ;;  %s884_s23 = smov 8  }
  0x12   :  { %32 = dma.hbm_to_vmem [thread:$0]  %s1012_s1, 8192, %s27_s13, [#allocation6], %s883_s22, %s883_s22, %s884_s23  }
  0x13   :  { %s885_s26 = smov [#allocation2]   ;;  %s886_s28 = smov [#allocation7]  }
  0x14   :  { %s17_s27 = sshll.u32 %s885_s26, 4  ;;  %s38_s29 = sshll.u32 %s886_s28, 4  ;;  %s18_s27 = int_to_ptr.vmem [resolvable:$true] %s17_s27  ;;  %s39_s29 = int_to_ptr.vmem [resolvable:$true] %s38_s29 }
  0x15   :  { %s810_s5 = scalar_lea.hbm %s1011_s0, 128 }
  0x16   :  { %p811_p8 = scmp.ne.s32.totalorder %s1011_s0, %s810_s5  ;;  %p814_p9 = scmp.lt.u32.totalorder %s810_s5, %s1011_s0 }
  0x18   :  { %p816_p10 = pnand %p814_p9, %p811_p8 }
  0x1a   :  { %819 = shalt.err (!%p816_p10)
}
  0x1b   :  { %s820_s1 = scalar_lea.vmem %s18_s27, 128  ;;  %p825_p12 = scmp.lt.s32.totalorder %s18_s27, %s18_s27 }
  0x1c   :  { %p821_p11 = scmp.ne.s32.totalorder %s18_s27, %s820_s1  ;;  %p826_p13 = scmp.lt.s32.totalorder %s820_s1, %s820_s1 }
  0x1e   :  { %p827_p0 = por %p826_p13, %p825_p12 }
  0x20   :  { %p828_p1 = pnand %p827_p0, %p821_p11 }
  0x22   :  { %831 = shalt.err (!%p828_p1)
}
  0x23   :  { %20 = dma.hbm_to_vmem [thread:$0]  %s1011_s0, 128, %s18_s27, [#allocation3]  }
  0x24   :  { %s832_s14 = scalar_lea.hbm %s1013_s2, 512 }
  0x25   :  { %p833_p2 = scmp.ne.s32.totalorder %s1013_s2, %s832_s14  ;;  %p836_p3 = scmp.lt.u32.totalorder %s832_s14, %s1013_s2 }
  0x27   :  { %p838_p4 = pnand %p836_p3, %p833_p2 }
  0x29   :  { %841 = shalt.err (!%p838_p4)
}
  0x2a   :  { %s842_s19 = scalar_lea.vmem %s39_s29, 512  ;;  %p847_p6 = scmp.lt.s32.totalorder %s39_s29, %s39_s29 }
  0x2b   :  { %p843_p5 = scmp.ne.s32.totalorder %s39_s29, %s842_s19  ;;  %p848_p7 = scmp.lt.s32.totalorder %s842_s19, %s842_s19 }
  0x2d   :  { %p849_p8 = por %p848_p7, %p847_p6 }
  0x2f   :  { %p850_p9 = pnand %p849_p8, %p843_p5 }
  0x31   :  { %853 = shalt.err (!%p850_p9)
}
  0x32   :  { %44 = dma.hbm_to_vmem [thread:$0]  %s1013_s2, 512, %s39_s29, [#allocation6], %s883_s22, %s883_s22, %s884_s23  }
  0x33   :  { %876 = dma.done.wait [#allocation3], 128  }
  0x34   :  { %877 = vsyncadd [#allocation3], 4294967168 }
  0x35   :  { %878 = dma.done.wait [#allocation6], 8704  }
  0x36   :  { %879 = vsyncadd [#allocation6], 4294958592  ;;  %v887_v0 = vmov 0.0|0.0   ;;  %vm888_vm0 = vmmov 0   ;;  %v889_v1 = vmov 0.0   ;;  %v55_v2 = vld [vmem:[#allocation5] sm:$0xff]  ;;  %v72_v54 = vlaneseq }
  0x37   :  { %671 = vmatprep.subr.bf16.mxu0 %v887_v0  ;;  %563 = vmatprep.mubr.msk.f32.mxu0 %vm888_vm0, %v889_v1  ;;  %v56_v3 = vld [vmem:[#allocation5 + $0x8] sm:$0xff]  ;;  %v57_v4 = vld [vmem:[#allocation5 + $0x10] sm:$0xff]  ;;  %v58_v6 = vld [vmem:[#allocation5 + $0x18] sm:$0xff]  ;;  %s890_s2 = smov [#allocation8]  }
  0x38   :  { %695 = vmatprep.subr.bf16.mxu1 %v887_v0  ;;  %598 = vmatprep.mubr.msk.f32.mxu1 %vm888_vm0, %v889_v1  ;;  %v672_v5 = vpack.c.bf16 %v56_v3, %v55_v2  ;;  %v675_v7 = vpack.c.bf16 %v58_v6, %v57_v4  ;;  %v59_v8 = vld [vmem:[#allocation5 + $0x20] sm:$0xff]  ;;  %v60_v9 = vld [vmem:[#allocation5 + $0x28] sm:$0xff]  ;;  %v61_v14 = vld [vmem:[#allocation5 + $0x30] sm:$0xff]  ;;  %v73_v55 = vshrl.u32 %v72_v54, 7  ;;  %s450_s21 = sshll.u32 %s890_s2, 4  ;;  %s451_s21 = int_to_ptr.vmem [resolvable:$true] %s450_s21 }
  0x39   :  { %v153_v10 = vld [vmem:[#allocation5 + $0x80] sm:$0xff]  ;;  %v154_v11 = vld [vmem:[#allocation5 + $0x88] sm:$0xff]  ;;  %v678_v12 = vpack.c.bf16 %v60_v9, %v59_v8  ;;  %v62_v15 = vld [vmem:[#allocation5 + $0x38] sm:$0xff]  ;;  %s854_s22 = scalar_lea.vmem %s451_s21, 128  ;;  %p859_p11 = scmp.lt.s32.totalorder %s451_s21, %s451_s21 }
  0x3a   :  { %673 = vmatpush3.bf16.msra.mxu0 %v672_v5  ;;  %v696_v13 = vpack.c.bf16 %v154_v11, %v153_v10  ;;  %v681_v16 = vpack.c.bf16 %v62_v15, %v61_v14  ;;  %v63_v17 = vld [vmem:[#allocation5 + $0x40] sm:$0xff]  ;;  %v64_v18 = vld [vmem:[#allocation5 + $0x48] sm:$0xff]  ;;  %v65_v20 = vld [vmem:[#allocation5 + $0x50] sm:$0xff]  ;;  %v978_v56 = vsub.s32 0, %v73_v55  ;;  %p855_p10 = scmp.ne.s32.totalorder %s451_s21, %s854_s22  ;;  %p860_p12 = scmp.lt.s32.totalorder %s854_s22, %s854_s22 }
  0x3b   :  { %674 = vmatprep.subr.bf16.mxu0 %v887_v0  ;;  %v684_v19 = vpack.c.bf16 %v64_v18, %v63_v17  ;;  %v66_v21 = vld [vmem:[#allocation5 + $0x58] sm:$0xff]  ;;  %v67_v23 = vld [vmem:[#allocation5 + $0x60] sm:$0xff]  ;;  %v68_v24 = vld [vmem:[#allocation5 + $0x68] sm:$0xff] }
  0x3c   :  { %697 = vmatpush3.bf16.msra.mxu1 %v696_v13  ;;  %v687_v22 = vpack.c.bf16 %v66_v21, %v65_v20  ;;  %v690_v25 = vpack.c.bf16 %v68_v24, %v67_v23  ;;  %v69_v26 = vld [vmem:[#allocation5 + $0x70] sm:$0xff]  ;;  %v70_v27 = vld [vmem:[#allocation5 + $0x78] sm:$0xff]  ;;  %v157_v33 = vld [vmem:[#allocation5 + $0xa0] sm:$0xff]  ;;  %p861_p13 = por %p860_p12, %p859_p11 }
  0x3d   :  { %698 = vmatprep.subr.bf16.mxu1 %v887_v0  ;;  %v693_v28 = vpack.c.bf16 %v70_v27, %v69_v26  ;;  %v54_v29 = vld [vmem:[#allocation2] sm:$0xff]  ;;  %v155_v30 = vld [vmem:[#allocation5 + $0x90] sm:$0xff]  ;;  %v158_v34 = vld [vmem:[#allocation5 + $0xa8] sm:$0xff] }
  0x3e   :  { %676 = vmatpush3.bf16.msra.mxu0 %v675_v7  ;;  %v156_v31 = vld [vmem:[#allocation5 + $0x98] sm:$0xff]  ;;  %v702_v35 = vpack.c.bf16 %v158_v34, %v157_v33  ;;  %v159_v36 = vld [vmem:[#allocation5 + $0xb0] sm:$0xff]  ;;  %v161_v39 = vld [vmem:[#allocation5 + $0xc0] sm:$0xff]  ;;  %p862_p0 = pnand %p861_p13, %p855_p10 }
  0x3f   :  { %677 = vmatprep.subr.bf16.mxu0 %v887_v0  ;;  %v699_v32 = vpack.c.bf16 %v156_v31, %v155_v30  ;;  %v160_v37 = vld [vmem:[#allocation5 + $0xb8] sm:$0xff]  ;;  %v162_v40 = vld [vmem:[#allocation5 + $0xc8] sm:$0xff]  ;;  %v163_v42 = vld [vmem:[#allocation5 + $0xd0] sm:$0xff] }
  0x40   :  { %v705_v38 = vpack.c.bf16 %v160_v37, %v159_v36  ;;  %v708_v41 = vpack.c.bf16 %v162_v40, %v161_v39  ;;  %v164_v43 = vld [vmem:[#allocation5 + $0xd8] sm:$0xff]  ;;  %v165_v45 = vld [vmem:[#allocation5 + $0xe0] sm:$0xff]  ;;  %v166_v46 = vld [vmem:[#allocation5 + $0xe8] sm:$0xff] }
  0x41   :  { %700 = vmatpush3.bf16.msra.mxu1 %v699_v32  ;;  %v711_v44 = vpack.c.bf16 %v164_v43, %v163_v42  ;;  %v714_v47 = vpack.c.bf16 %v166_v46, %v165_v45  ;;  %v167_v48 = vld [vmem:[#allocation5 + $0xf0] sm:$0xff]  ;;  %v168_v49 = vld [vmem:[#allocation5 + $0xf8] sm:$0xff]  ;;  %v252_v51 = vld [vmem:[#allocation5 + $0x100] sm:$0xff] }
  0x42   :  { %679 = vmatpush3.bf16.msra.mxu0 %v678_v12  ;;  %701 = vmatprep.subr.bf16.mxu1 %v887_v0  ;;  %v717_v50 = vpack.c.bf16 %v168_v49, %v167_v48  ;;  %v253_v52 = vld [vmem:[#allocation5 + $0x108] sm:$0xff]  ;;  %v71_v57 = vld [vmem:[#allocation7] sm:$0xff]  ;;  %v254_v4 = vld [vmem:[#allocation5 + $0x110] sm:$0xff] }
  0x43   :  { %680 = vmatprep.subr.bf16.mxu0 %v887_v0  ;;  %v720_v53 = vpack.c.bf16 %v253_v52, %v252_v51  ;;  %v75_v58 = vrot.slane %v71_v57, %v978_v56  ;;  %v255_v5 = vld [vmem:[#allocation5 + $0x118] sm:$0xff]  ;;  %v256_v7 = vld [vmem:[#allocation5 + $0x120] sm:$0xff]  ;;  %v257_v8 = vld [vmem:[#allocation5 + $0x128] sm:$0xff] }
  0x44   :  { %v723_v6 = vpack.c.bf16 %v255_v5, %v254_v4  ;;  %v726_v9 = vpack.c.bf16 %v257_v8, %v256_v7  ;;  %v258_v10 = vld [vmem:[#allocation5 + $0x130] sm:$0xff]  ;;  %v259_v11 = vld [vmem:[#allocation5 + $0x138] sm:$0xff]  ;;  %v260_v13 = vld [vmem:[#allocation5 + $0x140] sm:$0xff] }
  0x45   :  { %703 = vmatpush3.bf16.msra.mxu1 %v702_v35  ;;  %v729_v12 = vpack.c.bf16 %v259_v11, %v258_v10  ;;  %v262_v15 = vld [vmem:[#allocation5 + $0x150] sm:$0xff]  ;;  %v264_v18 = vld [vmem:[#allocation5 + $0x160] sm:$0xff]  ;;  %v170_v27 = vld [vmem:[#allocation7 + $0x8] sm:$0xff] }
  0x46   :  { %682 = vmatpush3.bf16.msra.mxu0 %v681_v16  ;;  %704 = vmatprep.subr.bf16.mxu1 %v887_v0  ;;  %v263_v16 = vld [vmem:[#allocation5 + $0x158] sm:$0xff]  ;;  %v266_v21 = vld [vmem:[#allocation5 + $0x170] sm:$0xff]  ;;  %v351_v24 = vld [vmem:[#allocation5 + $0x180] sm:$0xff] }
  0x47   :  { %683 = vmatprep.subr.bf16.mxu0 %v887_v0  ;;  %v735_v17 = vpack.c.bf16 %v263_v16, %v262_v15  ;;  %v353_v36 = vld [vmem:[#allocation5 + $0x190] sm:$0xff]  ;;  %v354_v37 = vld [vmem:[#allocation5 + $0x198] sm:$0xff]  ;;  %v355_v39 = vld [vmem:[#allocation5 + $0x1a0] sm:$0xff] }
  0x48   :  { %v356_v40 = vld [vmem:[#allocation5 + $0x1a8] sm:$0xff]  ;;  %v357_v42 = vld [vmem:[#allocation5 + $0x1b0] sm:$0xff]  ;;  %v358_v43 = vld [vmem:[#allocation5 + $0x1b8] sm:$0xff] }
  0x49   :  { %706 = vmatpush3.bf16.msra.mxu1 %v705_v38  ;;  %v747_v38 = vpack.c.bf16 %v354_v37, %v353_v36  ;;  %v359_v45 = vld [vmem:[#allocation5 + $0x1c0] sm:$0xff]  ;;  %v360_v46 = vld [vmem:[#allocation5 + $0x1c8] sm:$0xff]  ;;  %v361_v48 = vld [vmem:[#allocation5 + $0x1d0] sm:$0xff] }
  0x4a   :  { %685 = vmatpush3.bf16.msra.mxu0 %v684_v19  ;;  %707 = vmatprep.subr.bf16.mxu1 %v887_v0  ;;  %v265_v19 = vld [vmem:[#allocation5 + $0x168] sm:$0xff]  ;;  %v362_v49 = vld [vmem:[#allocation5 + $0x1d8] sm:$0xff]  ;;  %v363_v51 = vld [vmem:[#allocation5 + $0x1e0] sm:$0xff] }
  0x4b   :  { %686 = vmatprep.subr.bf16.mxu0 %v887_v0  ;;  %v738_v20 = vpack.c.bf16 %v265_v19, %v264_v18  ;;  %v364_v52 = vld [vmem:[#allocation5 + $0x1e8] sm:$0xff]  ;;  %v365_v54 = vld [vmem:[#allocation5 + $0x1f0] sm:$0xff]  ;;  %v366_v55 = vld [vmem:[#allocation5 + $0x1f8] sm:$0xff] }
  0x4c   :  { %v765_v57 = vpack.c.bf16 %v366_v55, %v365_v54  ;;  %v368_v5 = vld [vmem:[#allocation7 + $0x18] sm:$0xff] }
  0x4d   :  { %709 = vmatpush3.bf16.msra.mxu1 %v708_v41  ;;  %v750_v41 = vpack.c.bf16 %v356_v40, %v355_v39 }
  0x4e   :  { %688 = vmatpush3.bf16.msra.mxu0 %v687_v22  ;;  %710 = vmatprep.subr.bf16.mxu1 %v887_v0  ;;  %v267_v22 = vld [vmem:[#allocation5 + $0x178] sm:$0xff] }
  0x4f   :  { %689 = vmatprep.subr.bf16.mxu0 %v887_v0  ;;  %v741_v23 = vpack.c.bf16 %v267_v22, %v266_v21 }
  0x51   :  { %712 = vmatpush3.bf16.msra.mxu1 %v711_v44  ;;  %v753_v44 = vpack.c.bf16 %v358_v43, %v357_v42 }
  0x52   :  { %691 = vmatpush3.bf16.msra.mxu0 %v690_v25  ;;  %713 = vmatprep.subr.bf16.mxu1 %v887_v0  ;;  %v352_v25 = vld [vmem:[#allocation5 + $0x188] sm:$0xff] }
  0x53   :  { %692 = vmatprep.subr.bf16.mxu0 %v887_v0  ;;  %v744_v26 = vpack.c.bf16 %v352_v25, %v351_v24 }
  0x55   :  { %715 = vmatpush3.bf16.msra.mxu1 %v714_v47  ;;  %v756_v47 = vpack.c.bf16 %v360_v46, %v359_v45 }
  0x56   :  { %694 = vmatpush3.bf16.msra.mxu0 %v693_v28  ;;  %716 = vmatprep.subr.bf16.mxu1 %v887_v0  ;;  %v174_v28 = vrot.slane %v170_v27, %v978_v56 }
  0x57   :  { %719 = vmatprep.subr.bf16.mxu0 %v887_v0 }
  0x59   :  { %564 = vmatmul.mubr.f32.vlgmr.msra.gmra.mrb[0].mxu0 %v54_v29  ;;  %718 = vmatpush3.bf16.msra.mxu1 %v717_v50  ;;  %v759_v50 = vpack.c.bf16 %v362_v49, %v361_v48 }
  0x5a   :  { %633 = vmatprep.mubr.msk.f32.mxu0 %vm888_vm0, %v889_v1  ;;  %743 = vmatprep.subr.bf16.mxu1 %v887_v0 }
  0x5b   :  { %721 = vmatpush3.bf16.msra.mxu0 %v720_v53  ;;  %v762_v53 = vpack.c.bf16 %v364_v52, %v363_v51 }
  0x5c   :  { %722 = vmatprep.subr.bf16.mxu0 %v887_v0 }
  0x5f   :  { %724 = vmatpush3.bf16.msra.mxu0 %v723_v6  ;;  %v372_v6 = vrot.slane %v368_v5, %v978_v56 }
  0x60   :  { %725 = vmatprep.subr.bf16.mxu0 %v887_v0 }
  0x63   :  { %727 = vmatpush3.bf16.msra.mxu0 %v726_v9 }
  0x64   :  { %728 = vmatprep.subr.bf16.mxu0 %v887_v0 }
  0x67   :  { %730 = vmatpush3.bf16.msra.mxu0 %v729_v12 }
  0x68   :  { %731 = vmatprep.subr.bf16.mxu0 %v887_v0 }
 0x12c   :  { %v142_v59 = vpop.f32.mrb[0].mxu0 }
 0x12d   :  { %v143_v60 = vadd.f32 %v142_v59, %v75_v58  ;;  %v565_v61 = vpop.f32.mrb[1].mxu0  ;;  %v269_v58 = vld [vmem:[#allocation7 + $0x10] sm:$0xff] }
 0x12e   :  { %v273_v59 = vrot.slane %v269_v58, %v978_v56 }
 0x12f   :  { %v460_v62 = vmul.f32 -1.442695, %v143_v60 }
 0x131   :  { %776 = vpow2.f32 %v460_v62 }
 0x13b   :  { %v777_v63 = vpop.eup %776 }
 0x13c   :  { %v149_v2 = vadd.f32 1.0, %v777_v63 }
 0x13e   :  { %778 = vrcp.f32 %v149_v2 }
 0x148   :  { %v779_v3 = vpop.eup %778 }
 0x149   :  { %599 = vmatmul.mubr.f32.vlgmr.msra.gmra.mrb[0].mxu1 %v779_v3 }
 0x14a   :  { %668 = vmatprep.mubr.msk.f32.mxu1 %vm888_vm0, %v889_v1  ;;  %v261_v1 = vld [vmem:[#allocation5 + $0x148] sm:$0xff]  ;;  %745 = vmatpush3.bf16.msra.mxu1 %v744_v26 }
 0x14b   :  { %v732_v14 = vpack.c.bf16 %v261_v1, %v260_v13  ;;  %746 = vmatprep.subr.bf16.mxu1 %v887_v0 }
 0x14d   :  { %733 = vmatpush3.bf16.msra.mxu0 %v732_v14 }
 0x14e   :  { %734 = vmatprep.subr.bf16.mxu0 %v887_v0  ;;  %748 = vmatpush3.bf16.msra.mxu1 %v747_v38 }
 0x14f   :  { %749 = vmatprep.subr.bf16.mxu1 %v887_v0 }
 0x151   :  { %736 = vmatpush3.bf16.msra.mxu0 %v735_v17 }
 0x152   :  { %737 = vmatprep.subr.bf16.mxu0 %v887_v0  ;;  %751 = vmatpush3.bf16.msra.mxu1 %v750_v41 }
 0x153   :  { %752 = vmatprep.subr.bf16.mxu1 %v887_v0 }
 0x155   :  { %739 = vmatpush3.bf16.msra.mxu0 %v738_v20 }
 0x156   :  { %740 = vmatprep.subr.bf16.mxu0 %v887_v0  ;;  %754 = vmatpush3.bf16.msra.mxu1 %v753_v44 }
 0x157   :  { %755 = vmatprep.subr.bf16.mxu1 %v887_v0 }
 0x159   :  { %742 = vmatpush3.bf16.msra.mxu0 %v741_v23 }
 0x15a   :  { %757 = vmatpush3.bf16.msra.mxu1 %v756_v47 }
 0x15b   :  { %758 = vmatprep.subr.bf16.mxu1 %v887_v0 }
 0x15e   :  { %760 = vmatpush3.bf16.msra.mxu1 %v759_v50 }
 0x15f   :  { %761 = vmatprep.subr.bf16.mxu1 %v887_v0 }
 0x162   :  { %763 = vmatpush3.bf16.msra.mxu1 %v762_v53 }
 0x163   :  { %764 = vmatprep.subr.bf16.mxu1 %v887_v0 }
 0x166   :  { %766 = vmatpush3.bf16.msra.mxu1 %v765_v57 }
 0x21c   :  { %v241_v29 = vpop.f32.mrb[0].mxu1 }
 0x21d   :  { %v242_v30 = vadd.f32 %v241_v29, %v174_v28  ;;  %v600_v31 = vpop.f32.mrb[1].mxu1 }
 0x21f   :  { %v461_v32 = vmul.f32 -1.442695, %v242_v30 }
 0x221   :  { %780 = vpow2.f32 %v461_v32 }
 0x22b   :  { %v781_v33 = vpop.eup %780 }
 0x22c   :  { %v248_v34 = vadd.f32 1.0, %v781_v33 }
 0x22e   :  { %782 = vrcp.f32 %v248_v34 }
 0x238   :  { %v783_v35 = vpop.eup %782 }
 0x239   :  { %634 = vmatmul.mubr.f32.vlgmr.msra.gmra.mrb[2].mxu0 %v783_v35 }
 0x30c   :  { %v340_v60 = vpop.f32.mrb[2].mxu0 }
 0x30d   :  { %v341_v61 = vadd.f32 %v340_v60, %v273_v59  ;;  %v635_v62 = vpop.f32.mrb[3].mxu0 }
 0x30f   :  { %v462_v63 = vmul.f32 -1.442695, %v341_v61 }
 0x311   :  { %784 = vpow2.f32 %v462_v63 }
 0x31b   :  { %v785_v2 = vpop.eup %784 }
 0x31c   :  { %v347_v3 = vadd.f32 1.0, %v785_v2 }
 0x31e   :  { %786 = vrcp.f32 %v347_v3 }
 0x328   :  { %v787_v4 = vpop.eup %786 }
 0x329   :  { %669 = vmatmul.mubr.f32.vlgmr.msra.gmra.mrb[2].mxu1 %v787_v4 }
 0x3fc   :  { %v439_v0 = vpop.f32.mrb[2].mxu1 }
 0x3fd   :  { %v440_v7 = vadd.f32 %v439_v0, %v372_v6  ;;  %v670_v8 = vpop.f32.mrb[3].mxu1 }
 0x3ff   :  { %443 = vst [vmem:[#allocation8] sm:$0xff] %v440_v7 }
 0x400   :  { %865 = shalt.err (!%p862_p0)
}
 0x401   :  { %s866_s25 = scalar_lea.hbm %s1014_s3, 128 }
 0x402   :  { %p867_p1 = scmp.ne.s32.totalorder %s1014_s3, %s866_s25  ;;  %p870_p2 = scmp.lt.u32.totalorder %s866_s25, %s1014_s3 }
 0x404   :  { %p872_p3 = pnand %p870_p2, %p867_p1 }
 0x406   :  { %875 = shalt.err (!%p872_p3)
}
 0x407   :  { %453 = dma.vmem_to_hbm [thread:$0]  %s451_s21, 128, %s1014_s3, [#allocation4]  }
 0x408   :  { %880 = dma.done.wait [#allocation4], 128  }
 0x409   :  { %881 = vsyncadd [#allocation4], 4294967168 }
 0x40a   :  { %457 = vsyncpa [#allocation3], 1 }
 0x40b   :  { %458 = vsyncpa [#allocation6], 1 }
 0x40c   :  { %459 = vsyncpa [#allocation4], 1 }

</bundles_post_ra>
